<compile_context>
chip_gen: v7x
topology: tpu7x:2x2x1
jax: 0.10.0
libtpu: 0.0.40
codegen_flags: <defaults>
</compile_context>

<pallas_src>
from functools import partial

import jax
import jax.numpy as jnp
from jax.experimental import pallas as pl
from jax.experimental.pallas import tpu as pltpu


def _refined_reciprocal(v):
    """EUP approx reciprocal + one Newton step -> full f32 accuracy, no exact
    divide on the VALU critical path."""
    r = pl.reciprocal(v, approx=True)
    return r * (2.0 - v * r)


def _kl_kernel(x_ref, y_ref, out_ref, *, hw, s_blk, needs_mask, drop_epsilon):
    """Partial KL(softmax(gt) || softmax(net_output)) for one (batch, s-tile).

    x_ref, y_ref: (C, S_blk, 128) logit tiles (batch dim squeezed by BlockSpec).
    out_ref:      (S_blk, 128) f32 lane-dense accumulator, resident across the
                  spatial grid axis for the current batch index.
    """
    s_idx = pl.program_id(1)

    @pl.when(s_idx == 0)
    def _():
        out_ref[...] = jnp.zeros_like(out_ref)

    x = x_ref[...].astype(jnp.float32)  # net_output logits (C, S, 128)
    y = y_ref[...].astype(jnp.float32)  # gt logits         (C, S, 128)

    # --- net_output side: log(softmax(x) + 1e-8)  (matches PyTorch ref) ---
    x_max = jnp.max(x, axis=0, keepdims=True)        # C-way VPU max -> (1, S, 128)
    x_shift = x - x_max
    x_exp = jnp.exp(x_shift)                          # EUP
    x_sum = jnp.sum(x_exp, axis=0, keepdims=True)     # C-way VPU add -> (1, S, 128)
    if drop_epsilon:
        # Fast path (opt-in): pure log-softmax, removes one full-tile log.
        log_x = x_shift - jnp.log(x_sum)
    else:
        x_inv = _refined_reciprocal(x_sum)
        log_x = jnp.log(x_exp * x_inv + 1e-8)         # (C, S, 128)

    # --- gt side: softmax + log-softmax without a full-tile log ---
    y_max = jnp.max(y, axis=0, keepdims=True)
    y_shift = y - y_max
    y_exp = jnp.exp(y_shift)
    y_sum = jnp.sum(y_exp, axis=0, keepdims=True)
    y_prob = y_exp * _refined_reciprocal(y_sum)
    log_y = y_shift - jnp.log(y_sum)                  # log_softmax(y)

    # xlogy(p, p) - p*log_x == p * (log_y - log_x); underflowed y_exp gives 0*finite.
    row = jnp.sum(y_prob * (log_y - log_x), axis=0)   # (S_blk, 128)

    if needs_mask:
        # Zero out spatial positions that are padding (HW not covering the
        # full last block / the <=127-column lane pad).  Must happen BEFORE
        # the accumulation; garbage OOB reads are column-local to the softmax.
        s_iota = jax.lax.broadcasted_iota(jnp.int32, (s_blk, 128), 0)
        l_iota = jax.lax.broadcasted_iota(jnp.int32, (s_blk, 128), 1)
        pos = (s_idx * s_blk + s_iota) * 128 + l_iota
        row = jnp.where(pos < hw, row, 0.0)

    out_ref[...] += row


def _vmem_capacity_bytes():
    try:
        return int(pltpu.get_tpu_info().vmem_capacity_bytes)
    except Exception:
        return 64 << 20  # conservative (v7x-sized) fallback


def kl_loss_pallas(net_output, gt, loss_weight: float = 1.0,
                   drop_epsilon: bool = False, block_bytes=None):
    """Pallas equivalent of neosr kl_loss.forward (inputs in NCHW)."""
    assert net_output.shape == gt.shape
    N, C, H, W = net_output.shape
    HW = H * W
    LANE = 128

    # Free reshape (contiguous); keep original dtype (no HBM up-cast pass).
    x = net_output.reshape(N, C, HW)
    y = gt.reshape(N, C, HW)

    # Lane-dense re-layout: spatial axis -> (sublanes, lanes).  Only when HW is
    # not a multiple of 128 do we pad (<=127 columns) to make the reshape
    # possible; the padded positions are masked inside the kernel.
    hw_pad = ((HW + LANE - 1) // LANE) * LANE
    if hw_pad != HW:
        x = jnp.pad(x, ((0, 0), (0, 0), (0, hw_pad - HW)))
        y = jnp.pad(y, ((0, 0), (0, 0), (0, hw_pad - HW)))
    s_total = hw_pad // LANE
    x = x.reshape(N, C, s_total, LANE)
    y = y.reshape(N, C, s_total, LANE)

    # Per-generation block sizing (v5e/v6e: 128 MiB VMEM; v7x: 64 MiB).
    vmem_cap = _vmem_capacity_bytes()
    if vmem_cap >= (100 << 20):
        target_block, vmem_limit = 4 << 20, 96 << 20   # v5e / v6e
    else:
        target_block, vmem_limit = 2 << 20, 44 << 20   # v7x
    if block_bytes is not None:
        target_block = int(block_bytes)

    itemsize = jnp.dtype(net_output.dtype).itemsize
    sub_mult = max(8, 32 // itemsize)                  # 8 for f32, 16 for bf16
    # Size by the f32 in-kernel working set (4 bytes/elem), not input itemsize.
    s_blk = target_block // (4 * C * LANE)
    s_blk = max(sub_mult, (s_blk // sub_mult) * sub_mult)
    if s_blk >= s_total:
        s_blk = s_total                                # full extent always legal
    n_s = -(-s_total // s_blk)
    needs_mask = (n_s * s_blk * LANE) != HW

    out = pl.pallas_call(
        partial(_kl_kernel, hw=HW, s_blk=s_blk, needs_mask=needs_mask,
                drop_epsilon=drop_epsilon),
        out_shape=jax.ShapeDtypeStruct((N, s_blk, LANE), jnp.float32),
        grid_spec=pltpu.PrefetchScalarGridSpec(
            num_scalar_prefetch=0,
            grid=(N, n_s),  # batch outer (parallel), spatial tiles inner (accum)
            in_specs=[
                pl.BlockSpec((None, C, s_blk, LANE), lambda b, s: (b, 0, s, 0)),
                pl.BlockSpec((None, C, s_blk, LANE), lambda b, s: (b, 0, s, 0)),
            ],
            # Same output block across the spatial axis -> lane-dense accumulator.
            out_specs=pl.BlockSpec((None, s_blk, LANE), lambda b, s: (b, 0, 0)),
        ),
        compiler_params=pltpu.CompilerParams(
            dimension_semantics=("parallel", "arbitrary"),
            vmem_limit_bytes=vmem_limit,
        ),
    )(x, y)

    # batchmean (1/N), the 0.03 factor and loss_weight applied here so the
    # kernel accumulator stays scale-free (safe under any grid extension).
    return jnp.sum(out) * (0.03 * float(loss_weight) / float(N))


def _kl_loss_ref(net_output, gt, loss_weight: float = 1.0):
    """Pure-JAX reference mirroring the PyTorch forward."""
    x_prob = jax.nn.softmax(net_output, axis=1)
    y_prob = jax.nn.softmax(gt, axis=1)
    log_x = jnp.log(x_prob + 1e-8)
    xlogy_tt = jnp.where(y_prob > 0, y_prob * jnp.log(y_prob), 0.0)
    pointwise = xlogy_tt - y_prob * log_x
    loss = jnp.sum(pointwise) / net_output.shape[0]  # batchmean
    return loss * 0.03 * loss_weight


if __name__ == "__main__":
    key = jax.random.PRNGKey(0)
    k1, k2, k3, k4, k5, k6 = jax.random.split(key, 6)

    # 1) Lane-aligned NCHW image tensors (HW % 128 == 0).
    N, C, H, W = 2, 4, 16, 16
    net_output = jax.random.normal(k1, (N, C, H, W), dtype=jnp.float32)
    gt = jax.random.normal(k2, (N, C, H, W), dtype=jnp.float32)
    loss = jax.block_until_ready(kl_loss_pallas(net_output, gt, loss_weight=1.0))
    ref = _kl_loss_ref(net_output, gt, loss_weight=1.0)
    assert jnp.allclose(loss, ref, rtol=1e-3, atol=1e-6), (loss, ref)

    # 2) Ragged spatial size (HW % 128 != 0) -> in-kernel tail mask path.
    a = jax.random.normal(k3, (2, 3, 10, 10), dtype=jnp.float32)
    b = jax.random.normal(k4, (2, 3, 10, 10), dtype=jnp.float32)
    loss2 = jax.block_until_ready(kl_loss_pallas(a, b, loss_weight=0.5))
    ref2 = _kl_loss_ref(a, b, loss_weight=0.5)
    assert jnp.allclose(loss2, ref2, rtol=1e-3, atol=1e-6), (loss2, ref2)

    # 3) Multi-tile spatial grid (forced small block) -> accumulator path.
    c = jax.random.normal(k5, (2, 4, 64, 64), dtype=jnp.float32)
    d = jax.random.normal(k6, (2, 4, 64, 64), dtype=jnp.float32)
    loss3 = jax.block_until_ready(
        kl_loss_pallas(c, d, loss_weight=1.0, block_bytes=8 * 1024))
    ref3 = _kl_loss_ref(c, d, loss_weight=1.0)
    assert jnp.allclose(loss3, ref3, rtol=1e-3, atol=1e-6), (loss3, ref3)

    print("KERNEL_OK")
</pallas_src>

<mosaic_0001>
module attributes {stable_mosaic.version = 11 : i64} {
  func.func @_kl_kernel(%arg0: i32, %arg1: i32, %arg2: memref<1x4x2x128xf32, #tpu.memory_space<vmem>>, %arg3: memref<1x4x2x128xf32, #tpu.memory_space<vmem>>, %arg4: memref<1x2x128xf32, #tpu.memory_space<vmem>>) attributes {dimension_semantics = [#tpu.dimension_semantics<parallel>, #tpu.dimension_semantics<arbitrary>], iteration_bounds = array<i64: 2, 1>, scalar_prefetch = 0 : i64, scratch_operands = 0 : i64, tpu.core_type = #tpu.core_type<tc>, window_params = [{transform_indices = @transform_0, window_bounds = array<i64: 1, 4, 2, 128>}, {transform_indices = @transform_1, window_bounds = array<i64: 1, 4, 2, 128>}, {transform_indices = @transform_2, window_bounds = array<i64: 1, 2, 128>}]} {
    %c0_i32 = arith.constant 0 : i32
    %0 = arith.cmpi eq, %arg1, %c0_i32 : i32
    %1 = arith.extui %0 : i1 to i32
    %c0_i32_0 = arith.constant 0 : i32
    %2 = arith.cmpi ne, %1, %c0_i32_0 : i32
    scf.if %2 {
      %cst_21 = arith.constant 0.000000e+00 : f32
      %50 = vector.broadcast %cst_21 : f32 to vector<2x128xf32>
      %c0_22 = arith.constant 0 : index
      %c0_23 = arith.constant 0 : index
      %c0_24 = arith.constant 0 : index
      %51 = vector.load %arg4[%c0_22, %c0_23, %c0_24] : memref<1x2x128xf32, #tpu.memory_space<vmem>>, vector<1x2x128xf32>
      %52 = vector.shape_cast %51 : vector<1x2x128xf32> to vector<2x128xf32>
      %53 = vector.shape_cast %50 : vector<2x128xf32> to vector<1x2x128xf32>
      tpu.vector_store %arg4[%c0_22, %c0_23, %c0_24], %53 {strides = array<i32>} : memref<1x2x128xf32, #tpu.memory_space<vmem>>, vector<1x2x128xf32>,
    } else {
    }
    %c0 = arith.constant 0 : index
    %c0_1 = arith.constant 0 : index
    %c0_2 = arith.constant 0 : index
    %c0_3 = arith.constant 0 : index
    %3 = vector.load %arg2[%c0, %c0_1, %c0_2, %c0_3] : memref<1x4x2x128xf32, #tpu.memory_space<vmem>>, vector<1x4x2x128xf32>
    %4 = vector.shape_cast %3 : vector<1x4x2x128xf32> to vector<4x2x128xf32>
    %c0_4 = arith.constant 0 : index
    %c0_5 = arith.constant 0 : index
    %c0_6 = arith.constant 0 : index
    %c0_7 = arith.constant 0 : index
    %5 = vector.load %arg3[%c0_4, %c0_5, %c0_6, %c0_7] : memref<1x4x2x128xf32, #tpu.memory_space<vmem>>, vector<1x4x2x128xf32>
    %6 = vector.shape_cast %5 : vector<1x4x2x128xf32> to vector<4x2x128xf32>
    %cst = arith.constant dense<0xFF800000> : vector<2x128xf32>
    %7 = vector.multi_reduction <maximumf>, %4, %cst [0] : vector<4x2x128xf32> to vector<2x128xf32>
    %8 = vector.shape_cast %7 : vector<2x128xf32> to vector<1x2x128xf32>
    %9 = vector.broadcast %8 : vector<1x2x128xf32> to vector<4x2x128xf32>
    %10 = arith.subf %4, %9 : vector<4x2x128xf32>
    %11 = math.exp %10 : vector<4x2x128xf32>
    %cst_8 = arith.constant dense<0.000000e+00> : vector<2x128xf32>
    %12 = vector.multi_reduction <add>, %11, %cst_8 [0] : vector<4x2x128xf32> to vector<2x128xf32>
    %13 = vector.shape_cast %12 : vector<2x128xf32> to vector<1x2x128xf32>
    %14 = tpu.reciprocal %13 {approx = true} : vector<1x2x128xf32> -> vector<1x2x128xf32>
    %15 = arith.mulf %13, %14 : vector<1x2x128xf32>
    %cst_9 = arith.constant 2.000000e+00 : f32
    %16 = vector.broadcast %cst_9 : f32 to vector<1x2x128xf32>
    %17 = arith.subf %16, %15 : vector<1x2x128xf32>
    %18 = arith.mulf %14, %17 : vector<1x2x128xf32>
    %19 = vector.broadcast %18 : vector<1x2x128xf32> to vector<4x2x128xf32>
    %20 = arith.mulf %11, %19 : vector<4x2x128xf32>
    %cst_10 = arith.constant 9.99999993E-9 : f32
    %21 = vector.broadcast %cst_10 : f32 to vector<4x2x128xf32>
    %22 = arith.addf %20, %21 : vector<4x2x128xf32>
    %23 = math.log %22 : vector<4x2x128xf32>
    %cst_11 = arith.constant dense<0xFF800000> : vector<2x128xf32>
    %24 = vector.multi_reduction <maximumf>, %6, %cst_11 [0] : vector<4x2x128xf32> to vector<2x128xf32>
    %25 = vector.shape_cast %24 : vector<2x128xf32> to vector<1x2x128xf32>
    %26 = vector.broadcast %25 : vector<1x2x128xf32> to vector<4x2x128xf32>
    %27 = arith.subf %6, %26 : vector<4x2x128xf32>
    %28 = math.exp %27 : vector<4x2x128xf32>
    %cst_12 = arith.constant dense<0.000000e+00> : vector<2x128xf32>
    %29 = vector.multi_reduction <add>, %28, %cst_12 [0] : vector<4x2x128xf32> to vector<2x128xf32>
    %30 = vector.shape_cast %29 : vector<2x128xf32> to vector<1x2x128xf32>
    %31 = tpu.reciprocal %30 {approx = true} : vector<1x2x128xf32> -> vector<1x2x128xf32>
    %32 = arith.mulf %30, %31 : vector<1x2x128xf32>
    %cst_13 = arith.constant 2.000000e+00 : f32
    %33 = vector.broadcast %cst_13 : f32 to vector<1x2x128xf32>
    %34 = arith.subf %33, %32 : vector<1x2x128xf32>
    %35 = arith.mulf %31, %34 : vector<1x2x128xf32>
    %36 = vector.broadcast %35 : vector<1x2x128xf32> to vector<4x2x128xf32>
    %37 = arith.mulf %28, %36 : vector<4x2x128xf32>
    %38 = math.log %30 : vector<1x2x128xf32>
    %39 = vector.broadcast %38 : vector<1x2x128xf32> to vector<4x2x128xf32>
    %40 = arith.subf %27, %39 : vector<4x2x128xf32>
    %41 = arith.subf %40, %23 : vector<4x2x128xf32>
    %42 = arith.mulf %37, %41 : vector<4x2x128xf32>
    %cst_14 = arith.constant dense<0.000000e+00> : vector<2x128xf32>
    %43 = vector.multi_reduction <add>, %42, %cst_14 [0] : vector<4x2x128xf32> to vector<2x128xf32>
    %c0_15 = arith.constant 0 : index
    %c0_16 = arith.constant 0 : index
    %c0_17 = arith.constant 0 : index
    %44 = vector.load %arg4[%c0_15, %c0_16, %c0_17] : memref<1x2x128xf32, #tpu.memory_space<vmem>>, vector<1x2x128xf32>
    %45 = vector.shape_cast %44 : vector<1x2x128xf32> to vector<2x128xf32>
    %46 = arith.addf %45, %43 : vector<2x128xf32>
    %c0_18 = arith.constant 0 : index
    %c0_19 = arith.constant 0 : index
    %c0_20 = arith.constant 0 : index
    %47 = vector.load %arg4[%c0_18, %c0_19, %c0_20] : memref<1x2x128xf32, #tpu.memory_space<vmem>>, vector<1x2x128xf32>
    %48 = vector.shape_cast %47 : vector<1x2x128xf32> to vector<2x128xf32>
    %49 = vector.shape_cast %46 : vector<2x128xf32> to vector<1x2x128xf32>
    tpu.vector_store %arg4[%c0_18, %c0_19, %c0_20], %49 {strides = array<i32>} : memref<1x2x128xf32, #tpu.memory_space<vmem>>, vector<1x2x128xf32>,
    return
  }
  func.func @transform_0(%arg0: i32, %arg1: i32) -> (i32, i32, i32, i32) {
    %c0_i32 = arith.constant 0 : i32
    %c0_i32_0 = arith.constant 0 : i32
    %c0_i32_1 = arith.constant 0 : i32
    return %arg0, %c0_i32, %arg1, %c0_i32_0 : i32, i32, i32, i32
  }
  func.func @transform_1(%arg0: i32, %arg1: i32) -> (i32, i32, i32, i32) {
    %c0_i32 = arith.constant 0 : i32
    %c0_i32_0 = arith.constant 0 : i32
    %c0_i32_1 = arith.constant 0 : i32
    return %arg0, %c0_i32, %arg1, %c0_i32_0 : i32, i32, i32, i32
  }
  func.func @transform_2(%arg0: i32, %arg1: i32) -> (i32, i32, i32) {
    %c0_i32 = arith.constant 0 : i32
    %c0_i32_0 = arith.constant 0 : i32
    %c0_i32_1 = arith.constant 0 : i32
    return %arg0, %c0_i32, %c0_i32_0 : i32, i32, i32
  }
}

</mosaic_0001>

<bundles_post_ra>
// kernel: tpu_custom_call.1
= control target key start
LH: loop header
LB: loop body
LE: loop exit
PB: predicated region body
PF: predicated region fallthrough
CT: control target
= control target key end

     0   :  { %7 = vsyncpa [#allocation3], 0  ;;  %s1023_s0 = inlined_call_operand.hbm [shape: f32[2,4,2,128], index: 0, kind: input, shape index: {}]   ;;  %s1024_s1 = inlined_call_operand.hbm [shape: f32[2,4,2,128], index: 1, kind: input, shape index: {}]   ;;  %s1025_s2 = inlined_call_operand.hbm [shape: f32[2,2,128], index: 2, kind: output, shape index: {}]  }
   0x1   :  { %9 = vsyncpa [#allocation3 + $0x1], 0 }
   0x2   :  { %10 = vsyncpa [#allocation6], 0 }
   0x3   :  { %12 = vsyncpa [#allocation6 + $0x1], 0 }
   0x4   :  { %13 = vsyncpa [#allocation4], 0 }
   0x5   :  { %15 = vsyncpa [#allocation4 + $0x1], 0  ;;  %s746_s9 = smov 0   ;;  %s748_s10 = smov 0  }
   0x6   :  { %s750_s11 = smov 0   ;;  %s752_s12 = smov 0  }
   0x7   :  { %s754_s13 = smov 0   ;;  %s756_s14 = smov 0  }
   0x8 LB: > { %s457_s15 = sadd.s32 4294967295, %s723_s14   ;;  %s458_s16 = sadd.s32 4294967294, %s723_s14   ;;  %s723_s14 = sphi %s756_s14, %s21_s14   ;;  %s719_s13 = sphi %s754_s13, %s1043_s13   ;;  %s715_s12 = sphi %s752_s12, %s1042_s12   ;;  %s711_s11 = sphi %s750_s11, %s1041_s11   ;;  %s707_s10 = sphi %s748_s10, %s1040_s10   ;;  %s703_s9 = sphi %s746_s9, %s1039_s9  }
   0x9   : > { %s33_s17 = sadd.s32 1, %s719_s13  ;;  %s42_s18 = sadd.s32 1, %s711_s11 }
   0xa   : > { %p35_p0 = scmp.ge.s32.totalorder %s33_s17, 2  ;;  %p49_p1 = scmp.ne.s32.totalorder %s711_s11, %s707_s10 }
   0xb   : > { %p50_p2 = scmp.eq.s32.totalorder %s723_s14, 0  ;;  %p55_p3 = scmp.ne.s32.totalorder %s707_s10, %s703_s9 }
   0xc   : > { %s1045_s17 = smov (%p35_p0, %s33_s17), 0  ;;  %p56_p5 = scmp.eq.s32.totalorder %s457_s15, 0 }
   0xd   : > { %p787_p4 = por %p50_p2, %p49_p1  ;;  %s37_s20 = ssub.s32 %s719_s13, %s1045_s17 }
   0xe   : > { %p107_p6 = scmp.eq.s32.totalorder %s457_s15, 1  ;;  %p40_p7 = scmp.eq.s32.totalorder %s37_s20, 0 }
   0xf   : > { %p793_p8 = por %p56_p5, %p55_p3  ;;  %p113_p10 = scmp.eq.s32.totalorder %s458_s16, 1 }
  0x10   : > { %p797_p9 = por %p107_p6, %p49_p1  ;;  %p494_p13 = scmp.lt.s32.totalorder %s723_s14, 2 }
  0x11   : > { %s1029_s21 = scalar_select %p793_p8, 1, 0 }
  0x12   : > { %s1030_s22 = scalar_select %p797_p9, 1, 0 }
  0x13   : > { %s802_s23 = scalar_select %p40_p7, %s711_s11, %s42_s18  }
  0x14   : > { %p804_p11 = por %p113_p10, %p55_p3  ;;  %s811_s25 = sand.u32 1, %s711_s11  }
  0x15   : > { %s461_s26 = sshll.u32 %s811_s25, 3  ;;  %s475_s27 = sshll.u32 %s719_s13, 7 }
  0x16   : > { %s1031_s24 = scalar_select %p804_p11, 1, 0 }
  0x17   : > { %s820_s30 = scalar_lea.hbm %s1023_s0, %s475_s27  ;;  %s137_s3 = scalar_lea.vmem [#allocation2], %s461_s26 }
  0x18   : > { %s145_s4 = sshll.u32 %s137_s3, 4  ;;  %p828_p0 = pnand %p494_p13, %p787_p4  ;;  %s824_s4 = int_to_ptr.vmem [resolvable:$true] %s145_s4 }
  0x19   : > { %s134_s6 = scalar_lea.sflag [#allocation3], %s811_s25  ;;  %s577_s7 = scalar_lea.hbm %s820_s30, 128 }
  0x1a   : > { %p578_p2 = scmp.ne.s32.totalorder %s820_s30, %s577_s7  ;;  %p579_p3 = pneg %p828_p0 }
  0x1b   : > { %s582_s16 = scalar_lea.hbm %s1023_s0, 256  ;;  %p583_p4 = scmp.lt.u32.totalorder %s820_s30, %s1023_s0 }
  0x1c   : > { %p580_p5 = pnand %p579_p3, %p578_p2  ;;  %p584_p7 = scmp.lt.u32.totalorder %s582_s16, %s577_s7 }
  0x1d   : > { %p586_p13 = scmp.lt.u32.totalorder %s577_s7, %s820_s30 }
  0x1e   : > { %p581_p6 = pneg %p580_p5  ;;  %p585_p10 = por %p584_p7, %p583_p4 }
  0x20   : > { %p587_p12 = por %p586_p13, %p585_p10 }
  0x22   : > { %p588_p1 = pnand %p587_p12, %p581_p6 }
  0x24   : > { %591 = shalt.err (!%p588_p1)
}
  0x25   : > { %s592_s20 = scalar_lea.vmem %s824_s4, 128  ;;  %s725_s28 = smov [#allocation2]  }
  0x26   : > { %p593_p2 = scmp.ne.s32.totalorder %s824_s4, %s592_s20  ;;  %s597_s29 = sshll.u32 %s725_s28, 4  ;;  %s598_s29 = int_to_ptr.vmem [resolvable:$false] %s597_s29 }
  0x27   : > { %s599_s3 = scalar_lea.vmem %s598_s29, 256  ;;  %p600_p9 = scmp.lt.s32.totalorder %s824_s4, %s598_s29 }
  0x28   : > { %p595_p5 = pnand %p593_p2, %p579_p3  ;;  %p601_p4 = scmp.lt.s32.totalorder %s599_s3, %s592_s20 }
  0x2a   : > { %p596_p11 = pneg %p595_p5  ;;  %p602_p7 = por %p601_p4, %p600_p9 }
  0x2c   : > { %p603_p10 = pnand %p602_p7, %p596_p11 }
  0x2e   : > { %606 = shalt.err (!%p603_p10)
}
  0x2f   : > { %s726_s7 = smov 32   ;;  %s727_s8 = smov 2  }
  0x30   : > { %486 = dma.hbm_to_vmem [thread:$0]  (!%p828_p0), %s820_s30, 128, %s824_s4, %s134_s6, %s726_s7, %s726_s7, %s727_s8  }
  0x31   : > { %p175_p9 = scmp.lt.s32.totalorder %s723_s14, 3  ;;  %s870_s18 = scalar_lea.hbm %s1024_s1, %s475_s27 }
  0x32   : > { %p1033_p11 = scmp.ge.s32.totalorder %s723_s14, 1  ;;  %s159_s20 = scalar_lea.vmem [#allocation5], %s461_s26 }
  0x33   : > { %s167_s28 = sshll.u32 %s159_s20, 4  ;;  %s156_s30 = scalar_lea.sflag [#allocation6], %s811_s25  ;;  %s880_s28 = int_to_ptr.vmem [resolvable:$true] %s167_s28 }
  0x34   : > { %p874_p12 = pnand %p1033_p11, %p175_p9  ;;  %s607_s4 = scalar_lea.hbm %s870_s18, 128 }
  0x35   : > { %p608_p1 = scmp.ne.s32.totalorder %s870_s18, %s607_s4  ;;  %s612_s29 = scalar_lea.hbm %s1024_s1, 256 }
  0x36   : > { %p613_p2 = scmp.lt.u32.totalorder %s870_s18, %s1024_s1  ;;  %p614_p5 = scmp.lt.u32.totalorder %s612_s29, %s607_s4 }
  0x37   : > { %p610_p6 = pnand %p608_p1, %p579_p3  ;;  %p616_p7 = scmp.lt.u32.totalorder %s607_s4, %s870_s18 }
  0x38   : > { %p615_p4 = por %p614_p5, %p613_p2 }
  0x39   : > { %p611_p13 = pneg %p610_p6 }
  0x3a   : > { %p617_p10 = por %p616_p7, %p615_p4 }
  0x3c   : > { %p618_p9 = pnand %p617_p10, %p611_p13 }
  0x3e   : > { %621 = shalt.err (!%p618_p9)
}
  0x3f   : > { %s622_s26 = scalar_lea.vmem %s880_s28, 128  ;;  %s728_s16 = smov [#allocation5]  }
  0x40   : > { %p623_p11 = scmp.ne.s32.totalorder %s880_s28, %s622_s26  ;;  %s627_s20 = sshll.u32 %s728_s16, 4  ;;  %s628_s20 = int_to_ptr.vmem [resolvable:$false] %s627_s20 }
  0x41   : > { %s629_s27 = scalar_lea.vmem %s628_s20, 256  ;;  %p630_p8 = scmp.lt.s32.totalorder %s880_s28, %s628_s20 }
  0x42   : > { %p625_p1 = pnand %p623_p11, %p579_p3  ;;  %p631_p2 = scmp.lt.s32.totalorder %s629_s27, %s622_s26 }
  0x44   : > { %p626_p6 = pneg %p625_p1  ;;  %p632_p5 = por %p631_p2, %p630_p8 }
  0x46   : > { %p633_p4 = pnand %p632_p5, %p626_p6 }
  0x48   : > { %636 = shalt.err (!%p633_p4)
}
  0x49   : > { %489 = dma.hbm_to_vmem [thread:$0]  (!%p828_p0), %s870_s18, 128, %s880_s28, %s156_s30, %s726_s7, %s726_s7, %s727_s8  }
  0x4a   : > { %179 = sbr.rel (%p874_p12) target bundleno = 178 (0xb2), region = 28  ;;  %s914_s4 = sand.u32 (!%p874_p12), 1, %s707_s10  }
  0x4b   : > { %s468_s6 = sshll.u32 (!%p874_p12), %s914_s4, 3  ;;  %s182_s29 = scalar_lea.sflag (!%p874_p12), [#allocation3], %s914_s4 }
  0x4c   : > { %s185_s5 = scalar_lea.vmem (!%p874_p12), [#allocation2], %s468_s6  ;;  %p1035_p8 = scmp.ne.s32.totalorder (!%p874_p12), %s1029_s21, 0 }
  0x51   : > { %690 = dma.done.wait (%p1035_p8), %s182_s29, 128  }
  0x52   : > { %692 = vsyncadd (%p1035_p8), %s182_s29, 4294967168  ;;  %s191_s25 = scalar_lea.sflag [#allocation6], %s914_s4  ;;  %s194_s7 = scalar_lea.vmem [#allocation5], %s468_s6 }
  0x53   : > { %694 = dma.done.wait (%p1035_p8), %s191_s25, 128  }
  0x54   : > { %696 = vsyncadd (%p1035_p8), %s191_s25, 4294967168  ;;  %s470_s8 = sshll.u32 %s914_s4, 1  ;;  %v729_v0 = vmov 0.0   ;;  %vm233_vm0 = vcmask 1041408   ;;  %v225_v1 = vld [vmem:[%s185_s5] sm:$0x3] }
  0x55   : > { %s928_s18 = scalar_lea.vmem [#allocation7], %s470_s8  ;;  %v226_v2 = vld [vmem:[%s185_s5 + $0x2] sm:$0x3]  ;;  %v227_v3 = vld [vmem:[%s185_s5 + $0x4] sm:$0x3]  ;;  %v234_v9 = vsel %vm233_vm0, %v225_v1, -inf }
  0x56   : > { %224 = vst [vmem:[%s928_s18] sm:$0x3] %v729_v0  ;;  %v228_v4 = vld [vmem:[%s185_s5 + $0x6] sm:$0x3]  ;;  %v229_v5 = vld [vmem:[%s194_s7] sm:$0x3]  ;;  %v235_v10 = vsel %vm233_vm0, %v226_v2, -inf }
  0x57   : > { %v230_v6 = vld [vmem:[%s194_s7 + $0x2] sm:$0x3]  ;;  %v231_v7 = vld [vmem:[%s194_s7 + $0x4] sm:$0x3]  ;;  %v232_v8 = vld [vmem:[%s194_s7 + $0x6] sm:$0x3]  ;;  %v238_v13 = vmax.f32 %v234_v9, %v235_v10 }
  0x58   : > { %v236_v11 = vsel %vm233_vm0, %v227_v3, -inf  ;;  %v237_v12 = vsel %vm233_vm0, %v228_v4, -inf  ;;  %v280_v14 = vsel %vm233_vm0, %v229_v5, -inf  ;;  %v281_v16 = vsel %vm233_vm0, %v230_v6, -inf  ;;  %s472_s21 = sshll.u32 %s715_s12, 5  ;;  %s352_s19 = sshll.u32 %s928_s18, 4  ;;  %s975_s19 = int_to_ptr.vmem [resolvable:$true] %s352_s19 }
  0x59   : > { %v239_v15 = vmax.f32 %v236_v11, %v237_v12  ;;  %v282_v17 = vsel %vm233_vm0, %v231_v7, -inf  ;;  %v283_v18 = vsel %vm233_vm0, %v232_v8, -inf  ;;  %v284_v19 = vmax.f32 %v280_v14, %v281_v16  ;;  %s973_s3 = scalar_lea.hbm %s1025_s2, %s472_s21  ;;  %s339_s15 = scalar_lea.sflag [#allocation4], %s914_s4 }
  0x5a   : > { %v285_v20 = vmax.f32 %v282_v17, %v283_v18  ;;  %s637_s26 = scalar_lea.vmem %s975_s19, 32  ;;  %p1036_p3 = scmp.ne.s32.totalorder %s1030_s22, 0 }
  0x5b   : > { %v240_v21 = vmax.f32 %v238_v13, %v239_v15  ;;  %p638_p0 = scmp.ne.s32.totalorder %s975_s19, %s637_s26  ;;  %s730_s12 = smov [#allocation7]  }
  0x5c   : > { %v286_v22 = vmax.f32 %v284_v19, %v285_v20  ;;  %s641_s16 = sshll.u32 %s730_s12, 4  ;;  %s642_s16 = int_to_ptr.vmem [resolvable:$false] %s641_s16 }
  0x5d   : > { %v241_v23 = vsub.f32 %v225_v1, %v240_v21  ;;  %v242_v24 = vsub.f32 %v226_v2, %v240_v21  ;;  %v243_v25 = vsub.f32 %v227_v3, %v240_v21  ;;  %v244_v26 = vsub.f32 %v228_v4, %v240_v21  ;;  %p639_p12 = pnand %p638_p0, %p1036_p3  ;;  %s643_s20 = scalar_lea.vmem %s642_s16, 64 }
  0x5e   : > { %v939_v27 = vsub.f32 %v229_v5, %v286_v22  ;;  %v941_v28 = vsub.f32 %v230_v6, %v286_v22  ;;  %v943_v32 = vsub.f32 %v231_v7, %v286_v22  ;;  %v945_v34 = vsub.f32 %v232_v8, %v286_v22  ;;  %p644_p7 = scmp.lt.s32.totalorder %s975_s19, %s642_s16  ;;  %p645_p10 = scmp.lt.s32.totalorder %s643_s20, %s637_s26 }
  0x5f   : > { %v245_v29 = vmul.f32 1.442695, %v241_v23  ;;  %v247_v30 = vmul.f32 1.442695, %v242_v24  ;;  %v249_v31 = vmul.f32 1.442695, %v243_v25  ;;  %p640_p13 = pneg %p639_p12 }
  0x60   : > { %v251_v33 = vmul.f32 1.442695, %v244_v26  ;;  %v291_v35 = vmul.f32 1.442695, %v939_v27  ;;  %v293_v36 = vmul.f32 1.442695, %v941_v28  ;;  %p646_p9 = por %p645_p10, %p644_p7 }
  0x61   : > { %547 = vpow2.f32 %v245_v29  ;;  %v295_v37 = vmul.f32 1.442695, %v943_v32  ;;  %v297_v38 = vmul.f32 1.442695, %v945_v34 }
  0x62   : > { %549 = vpow2.f32 %v247_v30  ;;  %p647_p11 = pnand %p646_p9, %p640_p13 }
  0x63   : > { %551 = vpow2.f32 %v249_v31 }
  0x64   : > { %553 = vpow2.f32 %v251_v33 }
  0x65   : > { %555 = vpow2.f32 %v291_v35 }
  0x66   : > { %557 = vpow2.f32 %v293_v36 }
  0x67   : > { %559 = vpow2.f32 %v295_v37 }
  0x68   : > { %561 = vpow2.f32 %v297_v38 }
  0x6b   : > { %v548_v39 = vpop.eup %547 }
  0x6c   : > { %v550_v40 = vpop.eup %549  ;;  %v253_v41 = vsel %vm233_vm0, %v548_v39, 0.0 }
  0x6d   : > { %v552_v42 = vpop.eup %551  ;;  %v254_v43 = vsel %vm233_vm0, %v550_v40, 0.0 }
  0x6e   : > { %v554_v44 = vpop.eup %553  ;;  %v255_v45 = vadd.f32 %v254_v43, %v253_v41  ;;  %v256_v46 = vsel %vm233_vm0, %v552_v42, 0.0 }
  0x6f   : > { %v556_v47 = vpop.eup %555  ;;  %v258_v48 = vsel %vm233_vm0, %v554_v44, 0.0 }
  0x70   : > { %v558_v49 = vpop.eup %557  ;;  %v257_v50 = vadd.f32 %v256_v46, %v255_v45  ;;  %v299_v51 = vsel %vm233_vm0, %v556_v47, 0.0  ;;  %v335_v45 = vld [vmem:[%s928_s18] sm:$0x3] }
  0x71   : > { %v560_v52 = vpop.eup %559  ;;  %v300_v53 = vsel %vm233_vm0, %v558_v49, 0.0 }
  0x72   : > { %v562_v54 = vpop.eup %561  ;;  %v259_v55 = vadd.f32 %v258_v48, %v257_v50  ;;  %v301_v56 = vadd.f32 %v300_v53, %v299_v51  ;;  %v302_v57 = vsel %vm233_vm0, %v560_v52, 0.0 }
  0x73   : > { %v304_v59 = vsel %vm233_vm0, %v562_v54, 0.0 }
  0x74   : > { %563 = vrcp.f32 %v259_v55  ;;  %v303_v58 = vadd.f32 %v302_v57, %v301_v56 }
  0x76   : > { %v305_v60 = vadd.f32 %v304_v59, %v303_v58 }
  0x78   : > { %565 = vrcp.f32 %v305_v60 }
  0x79   : > { %567 = vlog2.f32 %v305_v60 }
  0x7e   : > { %v564_v61 = vpop.eup %563 }
  0x7f   : > { %v261_v62 = vmul.f32 %v564_v61, %v259_v55 }
  0x81   : > { %v262_v63 = vsub.f32 2.0, %v261_v62 }
  0x82   : > { %v566_v1 = vpop.eup %565 }
  0x83   : > { %v263_v0 = vmul.f32 %v564_v61, %v262_v63  ;;  %v307_v10 = vmul.f32 %v566_v1, %v305_v60  ;;  %v568_v11 = vpop.eup %567 }
  0x84   : > { %v315_v13 = vmul.f32 0.6931472, %v568_v11 }
  0x85   : > { %v264_v2 = vmul.f32 %v548_v39, %v263_v0  ;;  %v265_v3 = vmul.f32 %v550_v40, %v263_v0  ;;  %v266_v4 = vmul.f32 %v552_v42, %v263_v0  ;;  %v267_v5 = vmul.f32 %v554_v44, %v263_v0 }
  0x86   : > { %v308_v12 = vsub.f32 2.0, %v307_v10  ;;  %v316_v15 = vsub.f32 %v939_v27, %v315_v13  ;;  %v317_v17 = vsub.f32 %v941_v28, %v315_v13  ;;  %v318_v21 = vsub.f32 %v943_v32, %v315_v13 }
  0x87   : > { %v268_v6 = vadd.f32 1e-08, %v264_v2  ;;  %v269_v7 = vadd.f32 1e-08, %v265_v3  ;;  %v270_v8 = vadd.f32 1e-08, %v266_v4  ;;  %v319_v25 = vsub.f32 %v945_v34, %v315_v13 }
  0x88   : > { %v271_v9 = vadd.f32 1e-08, %v267_v5  ;;  %v309_v14 = vmul.f32 %v566_v1, %v308_v12 }
  0x89   : > { %569 = vlog2.f32 %v268_v6 }
  0x8a   : > { %571 = vlog2.f32 %v269_v7  ;;  %v310_v20 = vmul.f32 %v556_v47, %v309_v14  ;;  %v311_v24 = vmul.f32 %v558_v49, %v309_v14  ;;  %v312_v30 = vmul.f32 %v560_v52, %v309_v14 }
  0x8b   : > { %573 = vlog2.f32 %v270_v8  ;;  %v313_v27 = vmul.f32 %v562_v54, %v309_v14 }
  0x8c   : > { %575 = vlog2.f32 %v271_v9 }
  0x93   : > { %v570_v16 = vpop.eup %569 }
  0x94   : > { %v572_v18 = vpop.eup %571  ;;  %v273_v19 = vmul.f32 0.6931472, %v570_v16 }
  0x95   : > { %v574_v22 = vpop.eup %573  ;;  %v275_v23 = vmul.f32 0.6931472, %v572_v18 }
  0x96   : > { %v576_v26 = vpop.eup %575  ;;  %v277_v29 = vmul.f32 0.6931472, %v574_v22  ;;  %v320_v31 = vsub.f32 %v316_v15, %v273_v19 }
  0x97   : > { %v279_v33 = vmul.f32 0.6931472, %v576_v26  ;;  %v321_v28 = vsub.f32 %v317_v17, %v275_v23 }
  0x98   : > { %v322_v35 = vsub.f32 %v318_v21, %v277_v29  ;;  %v324_v36 = vmul.f32 %v320_v31, %v310_v20 }
  0x99   : > { %v323_v37 = vsub.f32 %v319_v25, %v279_v33  ;;  %v325_v38 = vmul.f32 %v321_v28, %v311_v24 }
  0x9a   : > { %v326_v32 = vmul.f32 %v322_v35, %v312_v30  ;;  %v328_v39 = vsel %vm233_vm0, %v324_v36, 0.0 }
  0x9b   : > { %v327_v34 = vmul.f32 %v323_v37, %v313_v27  ;;  %v329_v40 = vsel %vm233_vm0, %v325_v38, 0.0 }
  0x9c   : > { %v330_v41 = vadd.f32 %v329_v40, %v328_v39  ;;  %v331_v42 = vsel %vm233_vm0, %v326_v32, 0.0 }
  0x9d   : > { %v333_v43 = vsel %vm233_vm0, %v327_v34, 0.0 }
  0x9e   : > { %v332_v44 = vadd.f32 %v331_v42, %v330_v41 }
  0xa0   : > { %v334_v46 = vadd.f32 %v333_v43, %v332_v44 }
  0xa2   : > { %v336_v47 = vadd.f32 %v335_v45, %v334_v46 }
  0xa4   : > { %337 = vst [vmem:[%s928_s18] sm:$0x3] %v336_v47 }
  0xa5   : > { %650 = shalt.err (!%p647_p11)
}
  0xa6   : > { %s651_s27 = scalar_lea.hbm %s973_s3, 32  ;;  %s655_s29 = scalar_lea.hbm %s1025_s2, 64 }
  0xa7   : > { %p652_p1 = scmp.ne.s32.totalorder %s973_s3, %s651_s27  ;;  %p656_p5 = scmp.lt.u32.totalorder %s973_s3, %s1025_s2 }
  0xa8   : > { %p657_p4 = scmp.lt.u32.totalorder %s655_s29, %s651_s27  ;;  %p659_p0 = scmp.lt.u32.totalorder %s651_s27, %s973_s3 }
  0xa9   : > { %p653_p6 = pnand %p652_p1, %p1036_p3 }
  0xaa   : > { %p658_p8 = por %p657_p4, %p656_p5 }
  0xab   : > { %p654_p2 = pneg %p653_p6 }
  0xac   : > { %p660_p12 = por %p659_p0, %p658_p8 }
  0xae   : > { %p661_p13 = pnand %p660_p12, %p654_p2 }
  0xb0   : > { %664 = shalt.err (!%p661_p13)
}
  0xb1   : > { %481 = dma.vmem_to_hbm [thread:$0]  (%p1036_p3), %s975_s19, 32, %s973_s3, %s339_s15  }
  0xb2 PF: > { %s364_s7 = sand.u32 1, %s703_s9   ;;  %p1037_p7 = scmp.ne.s32.totalorder %s1031_s24, 0 }
  0xb3   : > { %p1038_p10 = scmp.ge.s32.totalorder %s723_s14, 2  ;;  %s365_s8 = scalar_lea.sflag [#allocation4], %s364_s7 }
  0xb5   : > { %p491_p9 = pnand %p1038_p10, %p1037_p7 }
  0xb7   : > { %698 = dma.done.wait (!%p491_p9), %s365_s8, 32  }
  0xb8   : > { %700 = vsyncadd (!%p491_p9), %s365_s8, 4294967264  ;;  %s21_s14 = sadd.s32 1, %s723_s14   ;;  %s1039_s9 = smov %s707_s10 }
  0xb9   : > { %p18_p11 = scmp.ge.s32.totalorder %s21_s14, 4   ;;  %s1040_s10 = smov %s711_s11 }
  0xba   : > { %s1041_s11 = smov %s802_s23  ;;  %s1042_s12 = smov %s719_s13 }
  0xbb   : > { %s1043_s13 = smov %s1045_s17  ;;  %20 = sbr.rel (!%p18_p11) target bundleno = 8 (0x8), region = 90 }
  0xc2   :  { %370 = vsyncpa [#allocation3], 1 }
  0xc3   :  { %372 = vsyncpa [#allocation3 + $0x1], 1 }
  0xc4   :  { %373 = vsyncpa [#allocation6], 1 }
  0xc5   :  { %375 = vsyncpa [#allocation6 + $0x1], 1 }
  0xc6   :  { %376 = vsyncpa [#allocation4], 1 }
  0xc7   :  { %378 = vsyncpa [#allocation4 + $0x1], 1 }

</bundles_post_ra>
